<compile_context>
chip_gen: v6e
topology: v6e:2x2x1
jax: 0.10.0
libtpu: 0.0.40
codegen_flags: <defaults>
</compile_context>

<pallas_src>
import jax
import jax.numpy as jnp
from jax.experimental import pallas as pl
from jax.experimental.pallas import tpu as pltpu

_LANES = 128
_SUBLANES = 8
_VREG_ELEMS = _SUBLANES * _LANES  # 1024


def _default_num_splits():
    """2 splits (one per TensorCore) only on v7x; 1 elsewhere."""
    try:
        kind = jax.devices()[0].device_kind.lower()
    except Exception:  # pragma: no cover - defensive
        return 1
    return 2 if ("v7" in kind or "7x" in kind) else 1


def _sq_err_sum_small(pred_flat, gt_flat):
    d = pred_flat.astype(jnp.float32) - gt_flat.astype(jnp.float32)
    return jnp.sum(d * d)


def _make_criterion_kernel(*, row_tile, tiles_per_split, rows_valid,
                           first_mask_block, needs_mask):
    """sum((pred - gt)^2) accumulated into an (8, 128) f32 vector accumulator."""

    def kernel(pred_ref, gt_ref, out_ref, acc_ref):
        i = pl.program_id(1)  # reduction ("arbitrary") axis

        @pl.when(i == 0)
        def _():
            acc_ref[...] = jnp.zeros_like(acc_ref)

        diff = pred_ref[...].astype(jnp.float32) - gt_ref[...].astype(jnp.float32)
        sq = diff * diff

        if needs_mask:
            c = pl.program_id(0)
            logical_block = c * tiles_per_split + i

            # Hot path: full, non-duplicated block -> plain vreg-shaped fold.
            @pl.when(logical_block < first_mask_block)
            def _():
                acc_ref[...] += sq.reshape(-1, _SUBLANES, _LANES).sum(axis=0)

            # Cold path (partial tail tile / clamp-duplicated blocks only):
            # zero out rows past the valid range.  jnp.where (select) is used
            # deliberately so NaN/Inf in unspecified padded contents cannot
            # propagate (do not replace with multiply-by-mask).
            @pl.when(logical_block >= first_mask_block)
            def _():
                row_ids = logical_block * row_tile + jax.lax.broadcasted_iota(
                    jnp.int32, sq.shape, 0)
                masked = jnp.where(row_ids < rows_valid, sq, 0.0)
                acc_ref[...] += masked.reshape(-1, _SUBLANES, _LANES).sum(axis=0)
        else:
            # Pure VPU adds (slack under a DMA-bound kernel); no XLU cross-lane
            # reduce and no serialized (1,1) scalar RMW in the hot loop.
            acc_ref[...] += sq.reshape(-1, _SUBLANES, _LANES).sum(axis=0)

        @pl.when(i == pl.num_programs(1) - 1)
        def _():
            out_ref[0] = acc_ref[...]

    return kernel


def task_criterion(pred, gt, inp, *, row_tile=None, num_splits=None):
    """Placeholder criterion: mean((pred - gt)^2).  Returns a scalar f32 loss.

    pred, gt: arrays of identical shape (any dtype; upcast to f32 in-kernel).
    inp: part of the TaskCriterion signature; unused by the template forward,
         so it is intentionally not passed to the kernel (zero HBM traffic).
    """
    # TODO(synk): base-class forward() is `raise NotImplementedError`; the MSE
    # reduction here is a placeholder hot path, not semantics from the module.
    del inp
    assert pred.shape == gt.shape
    n_valid = pred.size
    assert n_valid > 0

    pred_flat = pred.reshape(-1)
    gt_flat = gt.reshape(-1)

    itemsize = jnp.dtype(pred.dtype).itemsize
    if row_tile is None:
        # ~4 MiB per input block per pipeline step (8192 rows f32, 16384 bf16).
        row_tile = (4 << 20) // (_LANES * itemsize)
    if num_splits is None:
        num_splits = _default_num_splits()

    # Split off the (<1024-element) tail so the kernel slab is vreg-aligned.
    # Common aligned case: no copy at all.  Unaligned case: tiny jnp epilogue
    # instead of a whole-array jnp.pad copy.
    main = (n_valid // _VREG_ELEMS) * _VREG_ELEMS
    rem = n_valid - main

    tail = jnp.float32(0.0)
    if rem:
        tail = _sq_err_sum_small(pred_flat[main:], gt_flat[main:])

    if main == 0:
        # Entire input smaller than one vreg: not worth a kernel launch.
        return tail / jnp.float32(n_valid)

    rows = main // _LANES  # multiple of 8
    pred2 = (pred_flat if rem == 0 else pred_flat[:main]).reshape(rows, _LANES)
    gt2 = (gt_flat if rem == 0 else gt_flat[:main]).reshape(rows, _LANES)

    row_tile = min(row_tile, rows)  # both multiples of 8
    total_tiles = pl.cdiv(rows, row_tile)
    if total_tiles < num_splits:
        num_splits = 1
    tiles_per_split = pl.cdiv(total_tiles, num_splits)

    partial_last_tile = total_tiles * row_tile != rows
    duplicated_blocks = num_splits * tiles_per_split != total_tiles
    needs_mask = partial_last_tile or duplicated_blocks
    # First logical block that needs any masking (partial tail tile, if any;
    # everything past total_tiles is a clamp-duplicated block and fully zeroed).
    first_mask_block = total_tiles - 1 if partial_last_tile else total_tiles

    def in_index_map(c, i):
        # Clamp so trailing "extra" blocks of the last split stay in bounds;
        # their contribution is masked to zero inside the kernel.
        return (jnp.minimum(c * tiles_per_split + i, total_tiles - 1), 0)

    tile_spec = pl.BlockSpec((row_tile, _LANES), in_index_map)

    kernel = _make_criterion_kernel(
        row_tile=row_tile,
        tiles_per_split=tiles_per_split,
        rows_valid=rows,
        first_mask_block=first_mask_block,
        needs_mask=needs_mask,
    )

    # 2 inputs x 2 pipeline buffers x one block, plus headroom for the output
    # block, scratch and Mosaic internals.  Explicit so the 4 MiB default tile
    # also fits v5e's 16 MiB scoped-VMEM default.
    block_bytes = row_tile * _LANES * itemsize
    vmem_limit = max(2 * 2 * block_bytes + (8 << 20), 32 << 20)

    cost = pl.CostEstimate(
        flops=3 * main,  # sub + mul + add per element
        transcendentals=0,
        bytes_accessed=2 * main * itemsize + num_splits * _VREG_ELEMS * 4,
    )

    # Per-split partial sums, shaped as one (8, 128) vreg each (lane-dense).
    partials = pl.pallas_call(
        kernel,
        out_shape=jax.ShapeDtypeStruct((num_splits, _SUBLANES, _LANES), jnp.float32),
        grid_spec=pltpu.PrefetchScalarGridSpec(
            num_scalar_prefetch=0,
            grid=(num_splits, tiles_per_split),
            in_specs=[tile_spec, tile_spec],
            out_specs=pl.BlockSpec((1, _SUBLANES, _LANES), lambda c, i: (c, 0, 0)),
            scratch_shapes=[pltpu.VMEM((_SUBLANES, _LANES), jnp.float32)],
        ),
        compiler_params=pltpu.CompilerParams(
            # split axis shards across the 2 TensorCores on v7x; reduction axis
            # stays serial.
            dimension_semantics=("parallel", "arbitrary"),
            vmem_limit_bytes=int(vmem_limit),
        ),
        cost_estimate=cost,
    )(pred2, gt2)

    return (jnp.sum(partials) + tail) / jnp.float32(n_valid)


if __name__ == "__main__":
    key = jax.random.PRNGKey(0)
    k1, k2, k3 = jax.random.split(key, 3)

    # NCHW, matches the PyTorch convention.
    B, C, H, W = 2, 4, 16, 16
    pred = jax.random.normal(k1, (B, C, H, W), dtype=jnp.float32)
    gt = jax.random.normal(k2, (B, C, H, W), dtype=jnp.float32)
    inp = jax.random.normal(k3, (B, C, H, W), dtype=jnp.float32)

    loss = task_criterion(pred, gt, inp)
    jax.block_until_ready(loss)
    ref = jnp.mean((pred - gt) ** 2)
    assert jnp.allclose(loss, ref, rtol=1e-5, atol=1e-5), (loss, ref)

    # Exercise the split + duplicated-block (cold-path mask) branch.
    k4, k5, k6 = jax.random.split(k3, 3)
    pred_b = jax.random.normal(k4, (3, 4, 16, 16), dtype=jnp.float32)  # rows=24
    gt_b = jax.random.normal(k5, (3, 4, 16, 16), dtype=jnp.float32)
    inp_b = jax.random.normal(k6, (3, 4, 16, 16), dtype=jnp.float32)
    loss_b = task_criterion(pred_b, gt_b, inp_b, row_tile=8, num_splits=2)
    jax.block_until_ready(loss_b)
    ref_b = jnp.mean((pred_b - gt_b) ** 2)
    assert jnp.allclose(loss_b, ref_b, rtol=1e-5, atol=1e-5), (loss_b, ref_b)

    # Exercise the unaligned path: vreg-aligned prefix in-kernel + jnp tail.
    k7, k8 = jax.random.split(k6)
    pred_c = jax.random.normal(k7, (3, 701), dtype=jnp.float32)  # 2103 elems
    gt_c = jax.random.normal(k8, (3, 701), dtype=jnp.float32)
    loss_c = task_criterion(pred_c, gt_c, None)
    jax.block_until_ready(loss_c)
    ref_c = jnp.mean((pred_c - gt_c) ** 2)
    assert jnp.allclose(loss_c, ref_c, rtol=1e-5, atol=1e-5), (loss_c, ref_c)

    # Tiny input: handled entirely in the wrapper (no kernel launch).
    k9, k10 = jax.random.split(k8)
    pred_d = jax.random.normal(k9, (5, 7), dtype=jnp.float32)
    gt_d = jax.random.normal(k10, (5, 7), dtype=jnp.float32)
    loss_d = task_criterion(pred_d, gt_d, None)
    jax.block_until_ready(loss_d)
    ref_d = jnp.mean((pred_d - gt_d) ** 2)
    assert jnp.allclose(loss_d, ref_d, rtol=1e-5, atol=1e-5), (loss_d, ref_d)

    # bf16 inputs (halved HBM bytes; dtype-scaled row_tile path).
    pred_e = pred.astype(jnp.bfloat16)
    gt_e = gt.astype(jnp.bfloat16)
    loss_e = task_criterion(pred_e, gt_e, inp)
    jax.block_until_ready(loss_e)
    ref_e = jnp.mean((pred_e.astype(jnp.float32) - gt_e.astype(jnp.float32)) ** 2)
    assert jnp.allclose(loss_e, ref_e, rtol=1e-4, atol=1e-4), (loss_e, ref_e)

    print("KERNEL_OK")
</pallas_src>

<mosaic_0001>
module attributes {stable_mosaic.version = 11 : i64} {
  func.func @kernel(%arg0: i32, %arg1: i32, %arg2: memref<16x128xf32, #tpu.memory_space<vmem>>, %arg3: memref<16x128xf32, #tpu.memory_space<vmem>>, %arg4: memref<1x8x128xf32, #tpu.memory_space<vmem>>, %arg5: memref<8x128xf32, #tpu.memory_space<vmem>>) attributes {dimension_semantics = [#tpu.dimension_semantics<parallel>, #tpu.dimension_semantics<arbitrary>], iteration_bounds = array<i64: 1, 1>, scalar_prefetch = 0 : i64, scratch_operands = 1 : i64, tpu.core_type = #tpu.core_type<tc>, window_params = [{transform_indices = @transform_0, window_bounds = array<i64: 16, 128>}, {transform_indices = @transform_1, window_bounds = array<i64: 16, 128>}, {transform_indices = @transform_2, window_bounds = array<i64: 1, 8, 128>}]} {
    %c0_i32 = arith.constant 0 : i32
    %0 = arith.cmpi eq, %arg1, %c0_i32 : i32
    %1 = arith.extui %0 : i1 to i32
    %c0_i32_0 = arith.constant 0 : i32
    %2 = arith.cmpi ne, %1, %c0_i32_0 : i32
    scf.if %2 {
      %cst_10 = arith.constant 0.000000e+00 : f32
      %15 = vector.broadcast %cst_10 : f32 to vector<8x128xf32>
      %c0_11 = arith.constant 0 : index
      %c0_12 = arith.constant 0 : index
      %16 = vector.load %arg5[%c0_11, %c0_12] : memref<8x128xf32, #tpu.memory_space<vmem>>, vector<8x128xf32>
      tpu.vector_store %arg5[%c0_11, %c0_12], %15 {strides = array<i32>} : memref<8x128xf32, #tpu.memory_space<vmem>>, vector<8x128xf32>,
    } else {
    }
    %c0 = arith.constant 0 : index
    %c0_1 = arith.constant 0 : index
    %3 = vector.load %arg2[%c0, %c0_1] : memref<16x128xf32, #tpu.memory_space<vmem>>, vector<16x128xf32>
    %c0_2 = arith.constant 0 : index
    %c0_3 = arith.constant 0 : index
    %4 = vector.load %arg3[%c0_2, %c0_3] : memref<16x128xf32, #tpu.memory_space<vmem>>, vector<16x128xf32>
    %5 = arith.subf %3, %4 : vector<16x128xf32>
    %6 = arith.mulf %5, %5 : vector<16x128xf32>
    %c0_4 = arith.constant 0 : index
    %c0_5 = arith.constant 0 : index
    %7 = vector.load %arg5[%c0_4, %c0_5] : memref<8x128xf32, #tpu.memory_space<vmem>>, vector<8x128xf32>
    %8 = vector.shape_cast %6 : vector<16x128xf32> to vector<2x8x128xf32>
    %cst = arith.constant dense<0.000000e+00> : vector<8x128xf32>
    %9 = vector.multi_reduction <add>, %8, %cst [0] : vector<2x8x128xf32> to vector<8x128xf32>
    %10 = arith.addf %7, %9 : vector<8x128xf32>
    %c0_6 = arith.constant 0 : index
    %c0_7 = arith.constant 0 : index
    %11 = vector.load %arg5[%c0_6, %c0_7] : memref<8x128xf32, #tpu.memory_space<vmem>>, vector<8x128xf32>
    tpu.vector_store %arg5[%c0_6, %c0_7], %10 {strides = array<i32>} : memref<8x128xf32, #tpu.memory_space<vmem>>, vector<8x128xf32>,
    %c0_i32_8 = arith.constant 0 : i32
    %12 = arith.cmpi eq, %arg1, %c0_i32_8 : i32
    %13 = arith.extui %12 : i1 to i32
    %c0_i32_9 = arith.constant 0 : i32
    %14 = arith.cmpi ne, %13, %c0_i32_9 : i32
    scf.if %14 {
      %c0_10 = arith.constant 0 : index
      %c0_11 = arith.constant 0 : index
      %15 = vector.load %arg5[%c0_10, %c0_11] : memref<8x128xf32, #tpu.memory_space<vmem>>, vector<8x128xf32>
      %c0_12 = arith.constant 0 : index
      %c0_13 = arith.constant 0 : index
      %c0_14 = arith.constant 0 : index
      %16 = vector.load %arg4[%c0_12, %c0_13, %c0_14] : memref<1x8x128xf32, #tpu.memory_space<vmem>>, vector<1x8x128xf32>
      %17 = vector.shape_cast %16 : vector<1x8x128xf32> to vector<8x128xf32>
      %18 = vector.shape_cast %15 : vector<8x128xf32> to vector<1x8x128xf32>
      tpu.vector_store %arg4[%c0_12, %c0_13, %c0_14], %18 {strides = array<i32>} : memref<1x8x128xf32, #tpu.memory_space<vmem>>, vector<1x8x128xf32>,
    } else {
    }
    return
  }
  func.func @transform_0(%arg0: i32, %arg1: i32) -> (i32, i32) {
    %c1_i32 = arith.constant 1 : i32
    %0 = arith.muli %arg0, %c1_i32 : i32
    %1 = arith.addi %0, %arg1 : i32
    %c0_i32 = arith.constant 0 : i32
    %2 = arith.minsi %1, %c0_i32 : i32
    %c0_i32_0 = arith.constant 0 : i32
    %c0_i32_1 = arith.constant 0 : i32
    return %2, %c0_i32_0 : i32, i32
  }
  func.func @transform_1(%arg0: i32, %arg1: i32) -> (i32, i32) {
    %c1_i32 = arith.constant 1 : i32
    %0 = arith.muli %arg0, %c1_i32 : i32
    %1 = arith.addi %0, %arg1 : i32
    %c0_i32 = arith.constant 0 : i32
    %2 = arith.minsi %1, %c0_i32 : i32
    %c0_i32_0 = arith.constant 0 : i32
    %c0_i32_1 = arith.constant 0 : i32
    return %2, %c0_i32_0 : i32, i32
  }
  func.func @transform_2(%arg0: i32, %arg1: i32) -> (i32, i32, i32) {
    %c0_i32 = arith.constant 0 : i32
    %c0_i32_0 = arith.constant 0 : i32
    %c0_i32_1 = arith.constant 0 : i32
    return %arg0, %c0_i32, %c0_i32_0 : i32, i32, i32
  }
}

</mosaic_0001>

<bundles_post_ra>
// kernel: tpu_custom_call.1
= control target key start
LH: loop header
LB: loop body
LE: loop exit
PB: predicated region body
PF: predicated region fallthrough
CT: control target
= control target key end

     0   :  { %7 = vsyncpa [#allocation4], 0  ;;  %s202_s0 = inlined_call_operand.hbm [shape: f32[16,128], index: 0, kind: input, shape index: {}]   ;;  %s203_s1 = inlined_call_operand.hbm [shape: f32[16,128], index: 1, kind: input, shape index: {}]   ;;  %s204_s2 = inlined_call_operand.hbm [shape: f32[1,8,128], index: 2, kind: output, shape index: {}]  }
   0x1   :  { %8 = vsyncpa [#allocation7], 0 }
   0x2   :  { %9 = vsyncpa [#allocation5], 0  ;;  %s173_s9 = smov [#allocation3]  }
   0x3   :  { %s21_s10 = sshll.u32 %s173_s9, 4  ;;  %s22_s10 = int_to_ptr.vmem [resolvable:$true] %s21_s10 }
   0x4   :  { %s115_s11 = scalar_lea.vmem %s22_s10, 256  ;;  %p120_p1 = scmp.lt.s32.totalorder %s22_s10, %s22_s10 }
   0x5   :  { %p116_p0 = scmp.ne.s32.totalorder %s22_s10, %s115_s11  ;;  %p121_p2 = scmp.lt.s32.totalorder %s115_s11, %s115_s11 }
   0x7   :  { %p122_p3 = por %p121_p2, %p120_p1 }
   0x9   :  { %p123_p4 = pnand %p122_p3, %p116_p0 }
   0xb   :  { %126 = shalt.err (!%p123_p4)
}
   0xc   :  { %s174_s12 = smov 128   ;;  %s175_s13 = smov 8  }
   0xd   :  { %27 = dma.hbm_to_vmem [thread:$0]  %s202_s0, 256, %s22_s10, [#allocation4], %s174_s12, %s174_s12, %s175_s13  }
   0xe   :  { %s176_s16 = smov [#allocation6]  }
   0xf   :  { %s39_s17 = sshll.u32 %s176_s16, 4  ;;  %s40_s17 = int_to_ptr.vmem [resolvable:$true] %s39_s17 }
  0x10   :  { %s135_s18 = scalar_lea.vmem %s40_s17, 256  ;;  %p140_p6 = scmp.lt.s32.totalorder %s40_s17, %s40_s17 }
  0x11   :  { %p136_p5 = scmp.ne.s32.totalorder %s40_s17, %s135_s18  ;;  %p141_p7 = scmp.lt.s32.totalorder %s135_s18, %s135_s18 }
  0x13   :  { %p142_p8 = por %p141_p7, %p140_p6 }
  0x15   :  { %p143_p9 = pnand %p142_p8, %p136_p5 }
  0x17   :  { %146 = shalt.err (!%p143_p9)
}
  0x18   :  { %45 = dma.hbm_to_vmem [thread:$0]  %s203_s1, 256, %s40_s17, [#allocation7], %s174_s12, %s174_s12, %s175_s13  }
  0x19   :  { %167 = dma.done.wait [#allocation4], 256  }
  0x1a   :  { %168 = vsyncadd [#allocation4], 4294967040 }
  0x1b   :  { %169 = dma.done.wait [#allocation7], 256  }
  0x1c   :  { %170 = vsyncadd [#allocation7], 4294967040  ;;  %v65_v0 = vld [vmem:[#allocation3] sm:$0xff]  ;;  %v66_v1 = vld [vmem:[#allocation3 + $0x8] sm:$0xff]  ;;  %s177_s0 = smov [#allocation8]  }
  0x1d   :  { %v67_v2 = vld [vmem:[#allocation6] sm:$0xff]  ;;  %v68_v3 = vld [vmem:[#allocation6 + $0x8] sm:$0xff]  ;;  %s88_s21 = sshll.u32 %s177_s0, 4  ;;  %s89_s21 = int_to_ptr.vmem [resolvable:$true] %s88_s21 }
  0x1e   :  { %v69_v4 = vsub.f32 %v65_v0, %v67_v2  ;;  %v70_v5 = vsub.f32 %v66_v1, %v68_v3  ;;  %s147_s22 = scalar_lea.vmem %s89_s21, 128  ;;  %p152_p11 = scmp.lt.s32.totalorder %s89_s21, %s89_s21 }
  0x1f   :  { %p148_p10 = scmp.ne.s32.totalorder %s89_s21, %s147_s22  ;;  %p153_p12 = scmp.lt.s32.totalorder %s147_s22, %s147_s22 }
  0x20   :  { %v71_v6 = vmul.f32 %v69_v4, %v69_v4  ;;  %v72_v7 = vmul.f32 %v70_v5, %v70_v5 }
  0x21   :  { %p154_p13 = por %p153_p12, %p152_p11 }
  0x22   :  { %v74_v8 = vadd.f32 %v72_v7, %v71_v6 }
  0x23   :  { %p155_p0 = pnand %p154_p13, %p148_p10 }
  0x24   :  { %81 = vst [vmem:[#allocation8] sm:$0xff] %v74_v8 }
  0x25   :  { %158 = shalt.err (!%p155_p0)
}
  0x26   :  { %91 = dma.vmem_to_hbm [thread:$0]  %s89_s21, 128, %s204_s2, [#allocation5]  }
  0x27   :  { %171 = dma.done.wait [#allocation5], 128  }
  0x28   :  { %172 = vsyncadd [#allocation5], 4294967168 }
  0x29   :  { %95 = vsyncpa [#allocation4], 1 }
  0x2a   :  { %96 = vsyncpa [#allocation7], 1 }
  0x2b   :  { %97 = vsyncpa [#allocation5], 1 }

</bundles_post_ra>
